<compile_context>
chip_gen: v7x
topology: tpu7x:2x2x1
jax: 0.10.0
libtpu: 0.0.40
codegen_flags: <defaults>
</compile_context>

<pallas_src>
import functools

import jax
import jax.numpy as jnp
from jax.experimental import pallas as pl
from jax.experimental.pallas import tpu as pltpu


# ---------------------------------------------------------------------------
# Kernels
# ---------------------------------------------------------------------------

def _activate(y, activation):
    if activation == "ReLU":
        return jnp.maximum(y, 0.0)
    if activation == "Sigmoid":
        return jax.nn.sigmoid(y)
    # TODO(synk): GLU (splits the feature dim in half) needs cross-tile access
    # along N and is not implemented in-kernel.
    raise ValueError(f"unsupported activation: {activation!r}")


def _mlp_kernel_acc(x_ref, w_ref, b_ref, o_ref, acc_ref, *,
                    compute_dtype, activation):
    """Generic path: fp32 scratch accumulator, cast to o_ref.dtype in epilogue."""
    k = pl.program_id(2)

    @pl.when(k == 0)
    def _():
        acc_ref[...] = jnp.zeros_like(acc_ref)

    xv = x_ref[...]
    wv = w_ref[...]
    if compute_dtype is not None:
        xv = xv.astype(compute_dtype)   # in-kernel cast: no extra HBM pass
        wv = wv.astype(compute_dtype)
    acc_ref[...] += jnp.dot(xv, wv, preferred_element_type=jnp.float32)

    @pl.when(k == pl.num_programs(2) - 1)
    def _():
        y = acc_ref[...] + b_ref[...]           # (1, tn) fp32 bias broadcasts
        o_ref[...] = _activate(y, activation).astype(o_ref.dtype)


def _mlp_kernel_f32out(x_ref, w_ref, b_ref, o_ref, *,
                       compute_dtype, activation):
    """fp32-output path: accumulate directly into o_ref (resident across K)."""
    k = pl.program_id(2)

    @pl.when(k == 0)
    def _():
        o_ref[...] = jnp.zeros_like(o_ref)

    xv = x_ref[...]
    wv = w_ref[...]
    if compute_dtype is not None:
        xv = xv.astype(compute_dtype)
        wv = wv.astype(compute_dtype)
    o_ref[...] += jnp.dot(xv, wv, preferred_element_type=jnp.float32)

    @pl.when(k == pl.num_programs(2) - 1)
    def _():
        o_ref[...] = _activate(o_ref[...] + b_ref[...], activation)


# ---------------------------------------------------------------------------
# Tiling helpers
# ---------------------------------------------------------------------------

def _pick_tile(dim, target, aligns):
    """Largest tile <= target that divides `dim` and is aligned to one of
    `aligns` (coarsest first).  Falls back to the full dim (always legal)."""
    if dim <= target:
        return dim
    for align in aligns:
        t = (target // align) * align
        while t >= align:
            if dim % t == 0:
                return t
            t -= align
    return dim


def _tpu_defaults():
    """Generation-aware (tile_m, tile_n, tile_k, k_aligns, vmem_limit_cap)."""
    kind = ""
    try:
        kind = jax.devices()[0].device_kind.lower()
    except Exception:
        pass
    vmem_cap = None
    try:
        vmem_cap = int(pltpu.get_tpu_info().vmem_capacity_bytes)
    except Exception:
        pass

    if "v5" in kind:      # v5e: 4x128^2 MXU, 128 MiB VMEM, 1 vst slot
        return 256, 1024, 1024, (128,), 100 << 20
    if "v6" in kind:      # v6e: 2x256^2 MXU, 128 MiB VMEM
        return 512, 2048, 1024, (256, 128), 100 << 20
    if "v7" in kind:      # v7x: 64 MiB VMEM per core
        return 512, 1024, 1024, (256, 128), 46 << 20
    if vmem_cap is not None and vmem_cap >= (96 << 20):
        return 512, 2048, 1024, (256, 128), 100 << 20
    # Unknown / small-VMEM generation: conservative v7x-sized defaults.
    return 512, 1024, 1024, (256, 128), 46 << 20


# ---------------------------------------------------------------------------
# Wrapper
# ---------------------------------------------------------------------------

def mlp_layer(x, w, b, *, tile_m=None, tile_n=None, tile_k=None,
              compute_dtype=None, activation="ReLU"):
    """activation(x @ w + b).  x: (B, D_in), w: (D_in, D_out), b: (D_out,).

    compute_dtype (e.g. jnp.bfloat16) casts the x / W *tiles inside the
    kernel* before the MXU dot; accumulation and the epilogue stay fp32.
    Prefer storing w in bf16 at rest on v6e/v7x to also halve W HBM bytes.
    """
    B, D_in = x.shape
    D_out = w.shape[1]
    out_dtype = x.dtype

    d_tm, d_tn, d_tk, k_aligns, vmem_cap_limit = _tpu_defaults()
    tile_m = tile_m or d_tm
    tile_n = tile_n or d_tn
    tile_k = tile_k or d_tk

    x_isz = jnp.dtype(x.dtype).itemsize
    w_isz = jnp.dtype(w.dtype).itemsize
    o_isz = jnp.dtype(out_dtype).itemsize
    m_align = max(8, 32 // x_isz)        # sublane packing of the at-rest dtype

    # --- choose tiles ------------------------------------------------------
    # Small batch: tm = B so W streams from HBM exactly once per call.
    if B <= max(tile_m, 1024):
        tm = B
    else:
        tm = _pick_tile(B, tile_m, (m_align,))
    tn = _pick_tile(D_out, tile_n, (128,))       # lane-dense output columns
    tk = _pick_tile(D_in, tile_k, k_aligns)      # MXU-matched contraction dim

    use_acc_scratch = (out_dtype != jnp.float32)

    def _vmem_bytes(tm_, tn_, tk_):
        return (2 * tm_ * tk_ * x_isz            # x tiles (double-buffered)
                + 2 * tk_ * tn_ * w_isz          # w tiles
                + 2 * tn_ * 4                    # fp32 bias tiles
                + 2 * tm_ * tn_ * o_isz          # out tiles
                + (tm_ * tn_ * 4 if use_acc_scratch else 0))

    # Shrink tiles (K first, then N, then M) until the working set fits the
    # per-generation VMEM budget; fail loudly if nothing fits.
    budget = (vmem_cap_limit * 7) // 10          # headroom for compiler scratch
    for _ in range(64):
        if _vmem_bytes(tm, tn, tk) <= budget:
            break
        if tk > 128:
            nk = _pick_tile(D_in, max(tk // 2, 128), k_aligns)
            if nk < tk:
                tk = nk
                continue
        if tn > 128:
            nn = _pick_tile(D_out, max(tn // 2, 128), (128,))
            if nn < tn:
                tn = nn
                continue
        if tm > m_align:
            nm = _pick_tile(B, max(tm // 2, m_align), (m_align,))
            if nm < tm:
                tm = nm
                continue
        raise ValueError(
            f"mlp_layer: no tile decomposition of (B={B}, D_in={D_in}, "
            f"D_out={D_out}) fits the VMEM budget ({budget} bytes); pad the "
            "inputs to friendlier multiples.")

    # Keep both TensorCores busy (v7x megacore): if the parallel (M, N) grid
    # is 1x1 but D_out splits into two lane-dense halves, halve tn.
    if (B // tm) * (D_out // tn) == 1 and D_out % 256 == 0:
        tn = D_out // 2

    grid = (B // tm, D_out // tn, D_in // tk)

    vmem_limit = int(min(max(int(_vmem_bytes(tm, tn, tk) * 1.5) + (4 << 20),
                             16 << 20),
                         vmem_cap_limit))

    b2d = b.reshape(1, D_out).astype(jnp.float32)

    if use_acc_scratch:
        kernel = functools.partial(_mlp_kernel_acc,
                                   compute_dtype=compute_dtype,
                                   activation=activation)
        scratch_shapes = [pltpu.VMEM((tm, tn), jnp.float32)]
    else:
        kernel = functools.partial(_mlp_kernel_f32out,
                                   compute_dtype=compute_dtype,
                                   activation=activation)
        scratch_shapes = []

    return pl.pallas_call(
        kernel,
        out_shape=jax.ShapeDtypeStruct((B, D_out), out_dtype),
        grid_spec=pltpu.PrefetchScalarGridSpec(
            num_scalar_prefetch=0,
            grid=grid,
            in_specs=[
                pl.BlockSpec((tm, tk), lambda i, j, k: (i, k)),   # x
                pl.BlockSpec((tk, tn), lambda i, j, k: (k, j)),   # w (streamed)
                pl.BlockSpec((1, tn), lambda i, j, k: (0, j)),    # bias
            ],
            out_specs=pl.BlockSpec((tm, tn), lambda i, j, k: (i, j)),
            scratch_shapes=scratch_shapes,
        ),
        compiler_params=pltpu.CompilerParams(
            dimension_semantics=("parallel", "parallel", "arbitrary"),
            vmem_limit_bytes=vmem_limit,
        ),
    )(x, w, b2d)


def init_mlp_params(key, input_dim, output_dim, dtype=jnp.float32):
    # Matches nn.init.xavier_uniform_ (gain=1) on an (out, in) weight, stored
    # here as (in, out); bias initialized to zeros (nn.init.zeros_).
    bound = (6.0 / (input_dim + output_dim)) ** 0.5
    w = jax.random.uniform(key, (input_dim, output_dim), dtype,
                           minval=-bound, maxval=bound)
    b = jnp.zeros((output_dim,), dtype)
    return w, b


if __name__ == "__main__":
    key = jax.random.PRNGKey(0)
    k_x, k_w, k_x2, k_w2 = jax.random.split(key, 4)

    # --- small shape consistent with the module (single tile, fp32, ReLU) ---
    batch, input_dim, output_dim = 8, 32, 64
    x = jax.random.normal(k_x, (batch, input_dim), jnp.float32)
    w, b = init_mlp_params(k_w, input_dim, output_dim)

    y = jax.block_until_ready(mlp_layer(x, w, b))
    y_ref = jnp.maximum(x @ w + b, 0.0)
    assert y.shape == (batch, output_dim)
    assert jnp.allclose(y, y_ref, atol=1e-5, rtol=1e-5)

    # --- Sigmoid activation variant of the module ---
    y_sig = jax.block_until_ready(mlp_layer(x, w, b, activation="Sigmoid"))
    assert jnp.allclose(y_sig, jax.nn.sigmoid(x @ w + b), atol=1e-5, rtol=1e-5)

    # --- larger shape: exercises the multi-tile (N-split) path, fp32 ---
    B2, Din2, Dout2 = 128, 1024, 256
    x2 = jax.random.normal(k_x2, (B2, Din2), jnp.float32)
    w2, b2 = init_mlp_params(k_w2, Din2, Dout2)
    b2 = b2 + 0.01  # nonzero bias to exercise the epilogue add

    y2 = jax.block_until_ready(mlp_layer(x2, w2, b2))
    y2_ref = jnp.maximum(x2 @ w2 + b2, 0.0)
    assert jnp.allclose(y2, y2_ref, atol=1e-3, rtol=1e-3)

    # --- bf16 MXU compute path (cast happens in-kernel, fp32 accumulate) ---
    y2_bf16 = jax.block_until_ready(
        mlp_layer(x2, w2, b2, compute_dtype=jnp.bfloat16))
    assert jnp.allclose(y2_bf16, y2_ref, atol=1e-1, rtol=1e-1)

    # --- explicit K-tiled accumulate path (force small tk so grid K > 1) ---
    y2_k = jax.block_until_ready(mlp_layer(x2, w2, b2, tile_k=256))
    assert jnp.allclose(y2_k, y2_ref, atol=1e-3, rtol=1e-3)

    print("KERNEL_OK")
</pallas_src>

<mosaic_0001>
module attributes {stable_mosaic.version = 11 : i64} {
  func.func @_mlp_kernel_f32out(%arg0: i32, %arg1: i32, %arg2: i32, %arg3: memref<8x32xf32, #tpu.memory_space<vmem>>, %arg4: memref<32x64xf32, #tpu.memory_space<vmem>>, %arg5: memref<1x64xf32, #tpu.memory_space<vmem>>, %arg6: memref<8x64xf32, #tpu.memory_space<vmem>>) attributes {dimension_semantics = [#tpu.dimension_semantics<parallel>, #tpu.dimension_semantics<parallel>, #tpu.dimension_semantics<arbitrary>], iteration_bounds = array<i64: 1, 1, 1>, scalar_prefetch = 0 : i64, scratch_operands = 0 : i64, tpu.core_type = #tpu.core_type<tc>, window_params = [{transform_indices = @transform_0, window_bounds = array<i64: 8, 32>}, {transform_indices = @transform_1, window_bounds = array<i64: 32, 64>}, {transform_indices = @transform_2, window_bounds = array<i64: 1, 64>}, {transform_indices = @transform_3, window_bounds = array<i64: 8, 64>}]} {
    %c0_i32 = arith.constant 0 : i32
    %0 = arith.cmpi eq, %arg2, %c0_i32 : i32
    %1 = arith.extui %0 : i1 to i32
    %c0_i32_0 = arith.constant 0 : i32
    %2 = arith.cmpi ne, %1, %c0_i32_0 : i32
    scf.if %2 {
      %cst_10 = arith.constant 0.000000e+00 : f32
      %12 = vector.broadcast %cst_10 : f32 to vector<8x64xf32>
      %c0_11 = arith.constant 0 : index
      %c0_12 = arith.constant 0 : index
      %13 = vector.load %arg6[%c0_11, %c0_12] : memref<8x64xf32, #tpu.memory_space<vmem>>, vector<8x64xf32>
      tpu.vector_store %arg6[%c0_11, %c0_12], %12 {strides = array<i32>} : memref<8x64xf32, #tpu.memory_space<vmem>>, vector<8x64xf32>,
    } else {
    }
    %c0 = arith.constant 0 : index
    %c0_1 = arith.constant 0 : index
    %3 = vector.load %arg3[%c0, %c0_1] : memref<8x32xf32, #tpu.memory_space<vmem>>, vector<8x32xf32>
    %c0_2 = arith.constant 0 : index
    %c0_3 = arith.constant 0 : index
    %4 = vector.load %arg4[%c0_2, %c0_3] : memref<32x64xf32, #tpu.memory_space<vmem>>, vector<32x64xf32>
    %c0_4 = arith.constant 0 : index
    %c0_5 = arith.constant 0 : index
    %5 = vector.load %arg6[%c0_4, %c0_5] : memref<8x64xf32, #tpu.memory_space<vmem>>, vector<8x64xf32>
    %cst = arith.constant dense<0.000000e+00> : vector<8x64xf32>
    %6 = tpu.matmul %3, %4, %cst {dimension_numbers = #tpu.dot_dimension_numbers<[1], [0], [0], [1], [0, 0, 1, 1], [], []>} : vector<8x32xf32>, vector<32x64xf32>, vector<8x64xf32> -> vector<8x64xf32>
    %7 = arith.addf %5, %6 : vector<8x64xf32>
    %c0_6 = arith.constant 0 : index
    %c0_7 = arith.constant 0 : index
    %8 = vector.load %arg6[%c0_6, %c0_7] : memref<8x64xf32, #tpu.memory_space<vmem>>, vector<8x64xf32>
    tpu.vector_store %arg6[%c0_6, %c0_7], %7 {strides = array<i32>} : memref<8x64xf32, #tpu.memory_space<vmem>>, vector<8x64xf32>,
    %c0_i32_8 = arith.constant 0 : i32
    %9 = arith.cmpi eq, %arg2, %c0_i32_8 : i32
    %10 = arith.extui %9 : i1 to i32
    %c0_i32_9 = arith.constant 0 : i32
    %11 = arith.cmpi ne, %10, %c0_i32_9 : i32
    scf.if %11 {
      %c0_10 = arith.constant 0 : index
      %c0_11 = arith.constant 0 : index
      %12 = vector.load %arg6[%c0_10, %c0_11] : memref<8x64xf32, #tpu.memory_space<vmem>>, vector<8x64xf32>
      %c0_12 = arith.constant 0 : index
      %c0_13 = arith.constant 0 : index
      %13 = vector.load %arg5[%c0_12, %c0_13] : memref<1x64xf32, #tpu.memory_space<vmem>>, vector<1x64xf32>
      %14 = vector.broadcast %13 : vector<1x64xf32> to vector<8x64xf32>
      %15 = arith.addf %12, %14 : vector<8x64xf32>
      %cst_14 = arith.constant 0.000000e+00 : f32
      %16 = vector.broadcast %cst_14 : f32 to vector<8x64xf32>
      %17 = arith.maximumf %15, %16 : vector<8x64xf32>
      %c0_15 = arith.constant 0 : index
      %c0_16 = arith.constant 0 : index
      %18 = vector.load %arg6[%c0_15, %c0_16] : memref<8x64xf32, #tpu.memory_space<vmem>>, vector<8x64xf32>
      tpu.vector_store %arg6[%c0_15, %c0_16], %17 {strides = array<i32>} : memref<8x64xf32, #tpu.memory_space<vmem>>, vector<8x64xf32>,
    } else {
    }
    return
  }
  func.func @transform_0(%arg0: i32, %arg1: i32, %arg2: i32) -> (i32, i32) {
    %c0_i32 = arith.constant 0 : i32
    return %arg0, %arg2 : i32, i32
  }
  func.func @transform_1(%arg0: i32, %arg1: i32, %arg2: i32) -> (i32, i32) {
    %c0_i32 = arith.constant 0 : i32
    return %arg2, %arg1 : i32, i32
  }
  func.func @transform_2(%arg0: i32, %arg1: i32, %arg2: i32) -> (i32, i32) {
    %c0_i32 = arith.constant 0 : i32
    %c0_i32_0 = arith.constant 0 : i32
    return %c0_i32, %arg1 : i32, i32
  }
  func.func @transform_3(%arg0: i32, %arg1: i32, %arg2: i32) -> (i32, i32) {
    %c0_i32 = arith.constant 0 : i32
    return %arg0, %arg1 : i32, i32
  }
}

</mosaic_0001>

<bundles_post_ra>
// kernel: tpu_custom_call.1
= control target key start
LH: loop header
LB: loop body
LE: loop exit
PB: predicated region body
PF: predicated region fallthrough
CT: control target
= control target key end

     0   :  { %8 = vsyncpa [#allocation3], 0  ;;  %s341_s0 = inlined_call_operand.hbm [shape: f32[8,32], index: 0, kind: input, shape index: {}]   ;;  %s342_s1 = inlined_call_operand.hbm [shape: f32[32,64], index: 1, kind: input, shape index: {}]   ;;  %s343_s2 = inlined_call_operand.vmem [shape: f32[1,64], index: 2, kind: input, shape index: {}]   ;;  %s344_s3 = inlined_call_operand.hbm [shape: f32[8,64], index: 3, kind: output, shape index: {}]  }
   0x1   :  { %9 = vsyncpa [#allocation6], 0 }
   0x2   :  { %10 = vsyncpa [#allocation4], 0  ;;  %s264_s12 = smov [#allocation2]   ;;  %s265_s14 = smov [#allocation5]  }
   0x3   :  { %s17_s13 = sshll.u32 %s264_s12, 4  ;;  %s26_s15 = sshll.u32 %s265_s14, 4  ;;  %s18_s13 = int_to_ptr.vmem [resolvable:$true] %s17_s13  ;;  %s292_s15 = int_to_ptr.vmem [resolvable:$true] %s26_s15 }
   0x4   :  { %s192_s18 = scalar_lea.hbm %s341_s0, 128 }
   0x5   :  { %p193_p0 = scmp.ne.s32.totalorder %s341_s0, %s192_s18  ;;  %p196_p1 = scmp.lt.u32.totalorder %s192_s18, %s341_s0 }
   0x7   :  { %p198_p2 = pnand %p196_p1, %p193_p0 }
   0x9   :  { %201 = shalt.err (!%p198_p2)
}
   0xa   :  { %s202_s23 = scalar_lea.vmem %s18_s13, 128  ;;  %p207_p4 = scmp.lt.s32.totalorder %s18_s13, %s18_s13 }
   0xb   :  { %p203_p3 = scmp.ne.s32.totalorder %s18_s13, %s202_s23  ;;  %p208_p5 = scmp.lt.s32.totalorder %s202_s23, %s202_s23 }
   0xd   :  { %p209_p6 = por %p208_p5, %p207_p4 }
   0xf   :  { %p210_p7 = pnand %p209_p6, %p203_p3 }
  0x11   :  { %213 = shalt.err (!%p210_p7)
}
  0x12   :  { %20 = dma.hbm_to_vmem [thread:$0]  %s341_s0, 128, %s18_s13, [#allocation3]  }
  0x13   :  { %s214_s28 = scalar_lea.hbm %s342_s1, 512 }
  0x14   :  { %p215_p8 = scmp.ne.s32.totalorder %s342_s1, %s214_s28  ;;  %p218_p9 = scmp.lt.u32.totalorder %s214_s28, %s342_s1 }
  0x16   :  { %p220_p10 = pnand %p218_p9, %p215_p8 }
  0x18   :  { %223 = shalt.err (!%p220_p10)
}
  0x19   :  { %s224_s6 = scalar_lea.vmem %s292_s15, 512  ;;  %p229_p12 = scmp.lt.s32.totalorder %s292_s15, %s292_s15 }
  0x1a   :  { %p225_p11 = scmp.ne.s32.totalorder %s292_s15, %s224_s6  ;;  %p230_p13 = scmp.lt.s32.totalorder %s224_s6, %s224_s6 }
  0x1c   :  { %p231_p0 = por %p230_p13, %p229_p12 }
  0x1e   :  { %p232_p1 = pnand %p231_p0, %p225_p11 }
  0x20   :  { %235 = shalt.err (!%p232_p1)
}
  0x21   :  { %s266_s0 = smov 128   ;;  %s267_s7 = smov 8  }
  0x22   :  { %32 = dma.hbm_to_vmem [thread:$0]  %s342_s1, 512, %s292_s15, [#allocation6], %s266_s0, %s266_s0, %s267_s7  }
  0x23   :  { %258 = dma.done.wait [#allocation3], 128  }
  0x24   :  { %259 = vsyncadd [#allocation3], 4294967168 }
  0x25   :  { %260 = dma.done.wait [#allocation6], 512  }
  0x26   :  { %261 = vsyncadd [#allocation6], 4294966784  ;;  %vm45_vm0 = vcmask 523264   ;;  %v268_v0 = vmov 0.0|0.0   ;;  %v269_v1 = vmov 0.0   ;;  %vm270_vm1 = vmmov 0  }
  0x27   :  { %178 = vmatprep.subr.bf16.mxu0 %v268_v0  ;;  %46 = vst.msk [vmem:[#allocation7] sm:$0xff] %vm45_vm0, %v269_v1  ;;  %175 = vmatprep.mubr.msk.f32.mxu0 %vm270_vm1, %v269_v1  ;;  %v48_v2 = vld [vmem:[#allocation5] sm:$0xff]  ;;  %v49_v3 = vld [vmem:[#allocation5 + $0x8] sm:$0xff]  ;;  %v50_v4 = vld [vmem:[#allocation5 + $0x10] sm:$0xff]  ;;  %vm53_vm2 = vcmask 261120   ;;  %s271_s11 = smov [#allocation7]  }
  0x28   :  { %v179_v5 = vpack.c.bf16 %v49_v3, %v48_v2  ;;  %v51_v6 = vld [vmem:[#allocation5 + $0x18] sm:$0xff]  ;;  %s150_s12 = sshll.u32 %s271_s11, 4  ;;  %s151_s12 = int_to_ptr.vmem [resolvable:$true] %s150_s12 }
  0x29   :  { %v182_v7 = vpack.c.bf16 %v51_v6, %v50_v4  ;;  %v47_v8 = vld [vmem:[#allocation2] sm:$0xff]  ;;  %s236_s13 = scalar_lea.vmem %s151_s12, 128  ;;  %p241_p3 = scmp.lt.s32.totalorder %s151_s12, %s151_s12 }
  0x2a   :  { %180 = vmatpush3.bf16.msra.mxu0 %v179_v5  ;;  %v161_v13 = vld [vmem:[%s343_s2] ss:$0 sm:$0xff]  ;;  %p237_p2 = scmp.ne.s32.totalorder %s151_s12, %s236_s13  ;;  %p242_p4 = scmp.lt.s32.totalorder %s236_s13, %s236_s13 }
  0x2b   :  { %181 = vmatprep.subr.bf16.mxu0 %v268_v0 }
  0x2c   :  { %p243_p5 = por %p242_p4, %p241_p3 }
  0x2e   :  { %183 = vmatpush3.bf16.msra.mxu0 %v182_v7  ;;  %v52_v9 = vld [vmem:[#allocation7] sm:$0xff]  ;;  %p244_p6 = pnand %p243_p5, %p237_p2 }
  0x31   :  { %176 = vmatmul.mubr.msk.f32.vlgmr.msra.gmra.mrb[0].mxu0 %vm53_vm2, %v47_v8 }
 0x104   :  { %v123_v10 = vpop.f32.mrb[0].mxu0 }
 0x105   :  { %v127_v11 = vadd.f32 %v123_v10, %v52_v9  ;;  %v177_v12 = vpop.f32.mrb[1].mxu0 }
 0x107   :  { %129 = vst.msk [vmem:[#allocation7] sm:$0xff] %vm45_vm0, %v127_v11 }
 0x10e   :  { %v133_v14 = vld [vmem:[#allocation7] sm:$0xff] }
 0x10f   :  { %v141_v15 = vadd.f32 %v161_v13, %v133_v14 }
 0x111   :  { %v142_v16 = vmax.f32 %v141_v15, 0.0 }
 0x113   :  { %143 = vst.msk [vmem:[#allocation7] sm:$0xff] %vm45_vm0, %v142_v16 }
 0x114   :  { %247 = shalt.err (!%p244_p6)
}
 0x115   :  { %s248_s16 = scalar_lea.hbm %s344_s3, 128 }
 0x116   :  { %p249_p7 = scmp.ne.s32.totalorder %s344_s3, %s248_s16  ;;  %p252_p8 = scmp.lt.u32.totalorder %s248_s16, %s344_s3 }
 0x118   :  { %p254_p9 = pnand %p252_p8, %p249_p7 }
 0x11a   :  { %257 = shalt.err (!%p254_p9)
}
 0x11b   :  { %153 = dma.vmem_to_hbm [thread:$0]  %s151_s12, 128, %s344_s3, [#allocation4]  }
 0x11c   :  { %262 = dma.done.wait [#allocation4], 128  }
 0x11d   :  { %263 = vsyncadd [#allocation4], 4294967168 }
 0x11e   :  { %157 = vsyncpa [#allocation3], 1 }
 0x11f   :  { %158 = vsyncpa [#allocation6], 1 }
 0x120   :  { %159 = vsyncpa [#allocation4], 1 }

</bundles_post_ra>
